<compile_context>
chip_gen: v7x
topology: tpu7x:2x2x1
jax: 0.10.0
libtpu: 0.0.40
codegen_flags: <defaults>
</compile_context>

<pallas_src>
import functools

import jax
import jax.numpy as jnp
from jax import lax
from jax.experimental import pallas as pl
from jax.experimental.pallas import tpu as pltpu


def _atencao_kernel(*refs, has_mask, single_s, sb, seq_len, pad_cols):
    idx = 0
    feat_ref = refs[idx]; idx += 1                 # (Bb, Sb, D) native dtype
    mask_ref = None
    if has_mask:
        mask_ref = refs[idx]; idx += 1             # (Bb, Sb) int32
    w_ref = refs[idx]; idx += 1                    # (1, D) native dtype
    b_ref = refs[idx]; idx += 1                    # (1, 1) f32
    ctx_ref = refs[idx]; idx += 1                  # (Bb, D) out
    attw_ref = refs[idx]; idx += 1                 # (Bb, S_pad) out (resident)
    m_sc = refs[idx]; idx += 1                     # (Bb, 1) running max
    l_sc = refs[idx]; idx += 1                     # (Bb, 1) running denom
    ctx_sc = refs[idx]; idx += 1                   # (Bb, D) context accumulator
    sc_sc = refs[idx] if not single_s else None    # (Bb, S_pad) raw scores

    ki = pl.program_id(1)

    @pl.when(ki == 0)
    def _init():
        m_sc[...] = jnp.full_like(m_sc, -jnp.inf)
        l_sc[...] = jnp.zeros_like(l_sc)
        ctx_sc[...] = jnp.zeros_like(ctx_sc)

    feat = feat_ref[...]                           # native dtype (bf16 or f32)
    w = w_ref[...]                                 # (1, D) native dtype

    # Scores: native-dtype VPU multiply, f32 accumulation on the lane reduce.
    s_blk = jnp.sum(feat * w, axis=-1, dtype=jnp.float32) + b_ref[...]  # (Bb,Sb)

    if mask_ref is not None:
        s_blk = jnp.where(mask_ref[...] == 0, jnp.float32(-1e9), s_blk)
    elif pad_cols:
        # No user mask, but the sequence was padded: mask padded columns.
        col = ki * sb + lax.broadcasted_iota(jnp.int32, s_blk.shape, 1)
        s_blk = jnp.where(col < seq_len, s_blk, jnp.float32(-1e9))

    if not single_s:
        off = pl.multiple_of(ki * sb, sb)          # 128-aligned store offset
        sc_sc[:, pl.ds(off, sb)] = s_blk

    # Online softmax update.
    m_prev = m_sc[...]
    m_new = jnp.maximum(m_prev, jnp.max(s_blk, axis=-1, keepdims=True))
    alpha = jnp.exp(m_prev - m_new)                # (Bb, 1)
    p = jnp.exp(s_blk - m_new)                     # (Bb, Sb) f32

    l_sc[...] = alpha * l_sc[...] + jnp.sum(p, axis=-1, keepdims=True)
    # Context: native-dtype product, f32 accumulation on the sublane reduce.
    ctx_sc[...] = alpha * ctx_sc[...] + jnp.sum(
        p.astype(feat.dtype)[:, :, None] * feat, axis=1, dtype=jnp.float32)
    m_sc[...] = m_new

    @pl.when(ki == pl.num_programs(1) - 1)
    def _finalize():
        inv_l = 1.0 / l_sc[...]                    # exact divide; only (Bb, 1)
        ctx_ref[...] = (ctx_sc[...] * inv_l).astype(ctx_ref.dtype)
        if single_s:
            wts = p * inv_l
        else:
            wts = jnp.exp(sc_sc[...] - m_sc[...]) * inv_l
        attw_ref[...] = wts.astype(attw_ref.dtype)


def _round_up(x, m):
    return ((x + m - 1) // m) * m


def _vmem_limit_bytes():
    try:
        cap = int(pltpu.get_tpu_info().vmem_capacity_bytes)
    except Exception:  # conservative fallback (v7x has the smallest VMEM)
        cap = 64 << 20
    return max(32 << 20, min((cap * 3) // 4, 96 << 20))


def _choose_tiles(B, S, D, itemsize, budget_bytes):
    """Pick (batch_tile, padded_B, seq_tile, padded_S).

    batch_tile is a multiple of 8; seq_tile is the full S when the slab fits
    the budget, otherwise a multiple of 128 (online softmax across S steps)."""
    b8 = _round_up(max(B, 1), 8)
    row_bytes = max(1, S * D * itemsize)           # one batch row, full S

    bb = 8
    while bb * 2 <= b8 and bb * 2 <= 128 and bb * 2 * row_bytes <= budget_bytes:
        bb *= 2
    # Keep >= 2 batch steps whenever the (padded) batch allows it, so the
    # "parallel" batch axis can shard across v7x's two TensorCores.
    if bb == b8 and B > 8:
        bb = max(8, bb // 2)
    b_pad = _round_up(max(B, 1), bb)

    if bb * row_bytes <= budget_bytes:
        sb, s_pad = S, S
    else:
        sb = (budget_bytes // (bb * D * itemsize)) // 128 * 128
        sb = int(max(128, sb))
        s_pad = _round_up(S, sb)
        sb = min(sb, s_pad)
    return bb, b_pad, sb, s_pad


def atencao_seletiva(features, weight, bias, mask=None, *, tile_hint=None):
    """features: (B, S, D); weight: (1, D) [nn.Linear(D, 1).weight];
    bias: (1,); mask: (B, S) or None.  Returns (context (B, D), weights (B, S, 1))."""
    B, S, D = features.shape
    out_dtype = features.dtype
    itemsize = jnp.dtype(features.dtype).itemsize

    vmem_limit = _vmem_limit_bytes()
    if tile_hint is None:
        bb, b_pad, sb, s_pad = _choose_tiles(B, S, D, itemsize, vmem_limit // 8)
    else:  # explicit tiles (testing / tuning)
        bb, sb = tile_hint
        bb = _round_up(max(bb, 1), 8)
        sb = S if sb >= S else _round_up(max(sb, 1), 128)
        b_pad = _round_up(B, bb)
        s_pad = _round_up(S, sb)

    single_s = (sb == s_pad)
    has_mask = mask is not None
    pad_cols = (s_pad != S) and not has_mask

    feat = features
    if (b_pad, s_pad) != (B, S):
        feat = jnp.pad(feat, ((0, b_pad - B), (0, s_pad - S), (0, 0)))

    inputs = [feat]
    in_specs = [pl.BlockSpec((bb, sb, D), lambda bi, ki: (bi, ki, 0))]

    if has_mask:
        # int32 keeps the 32-bit (8,128) layout; padded rows/cols get zeros so
        # they are masked to -1e9 (their outputs are discarded by the wrapper).
        m = (mask.reshape(B, S) != 0).astype(jnp.int32)
        if (b_pad, s_pad) != (B, S):
            m = jnp.pad(m, ((0, b_pad - B), (0, s_pad - S)))
        inputs.append(m)
        in_specs.append(pl.BlockSpec((bb, sb), lambda bi, ki: (bi, ki)))

    w2 = weight.reshape(1, D).astype(features.dtype)       # native-dtype weight
    b2 = jnp.asarray(bias, jnp.float32).reshape(1, 1)
    inputs += [w2, b2]
    in_specs += [pl.BlockSpec((1, D), lambda bi, ki: (0, 0)),
                 pl.BlockSpec((1, 1), lambda bi, ki: (0, 0))]

    scratch_shapes = [pltpu.VMEM((bb, 1), jnp.float32),     # running max
                      pltpu.VMEM((bb, 1), jnp.float32),     # running denom
                      pltpu.VMEM((bb, D), jnp.float32)]     # context accumulator
    if not single_s:
        scratch_shapes.append(pltpu.VMEM((bb, s_pad), jnp.float32))  # raw scores

    kernel = functools.partial(_atencao_kernel, has_mask=has_mask,
                               single_s=single_s, sb=sb, seq_len=S,
                               pad_cols=pad_cols)

    ctx, attw = pl.pallas_call(
        kernel,
        out_shape=(jax.ShapeDtypeStruct((b_pad, D), out_dtype),      # context
                   jax.ShapeDtypeStruct((b_pad, s_pad), out_dtype)), # weights
        grid_spec=pltpu.PrefetchScalarGridSpec(
            num_scalar_prefetch=0,
            grid=(b_pad // bb, s_pad // sb),
            in_specs=in_specs,
            out_specs=[pl.BlockSpec((bb, D), lambda bi, ki: (bi, 0)),
                       pl.BlockSpec((bb, s_pad), lambda bi, ki: (bi, 0))],
            scratch_shapes=scratch_shapes),
        compiler_params=pltpu.CompilerParams(
            dimension_semantics=("parallel", "arbitrary"),
            vmem_limit_bytes=vmem_limit),
    )(*inputs)

    # PyTorch returns weights as (B, S, 1).
    return ctx[:B], attw[:B, :S].reshape(B, S, 1)


def _reference(features, weight, bias, mask=None):
    # Pure-JAX reference mirroring the PyTorch module (f32).
    f = features.astype(jnp.float32)
    scores = jnp.einsum("bsd,od->bso", f, weight.astype(jnp.float32)) + bias
    if mask is not None:
        scores = jnp.where(mask[..., None] == 0, -1e9, scores)
    wts = jax.nn.softmax(scores, axis=1)
    ctx = jnp.einsum("bsd,bso->bdo", f, wts)[..., 0]
    return ctx, wts


if __name__ == "__main__":
    B, S, D = 2, 8, 32
    key = jax.random.PRNGKey(0)
    k_feat, k_w, k_b, k_m = jax.random.split(key, 4)

    features = jax.random.normal(k_feat, (B, S, D), dtype=jnp.float32)
    weight = jax.random.normal(k_w, (1, D), dtype=jnp.float32) * 0.1
    bias = jax.random.normal(k_b, (1,), dtype=jnp.float32) * 0.1
    mask = (jax.random.uniform(k_m, (B, S)) > 0.25).astype(jnp.int32)

    # 1) masked path (single sequence block, padded batch)
    ctx, attw = atencao_seletiva(features, weight, bias, mask)
    jax.block_until_ready((ctx, attw))
    ctx_ref, attw_ref = _reference(features, weight, bias, mask)
    assert ctx.shape == (B, D) and attw.shape == (B, S, 1)
    assert jnp.allclose(ctx, ctx_ref, atol=2e-3, rtol=2e-3)
    assert jnp.allclose(attw, attw_ref, atol=2e-3, rtol=2e-3)

    # 2) mask=None path (no mask input DMA'd at all)
    ctx2, attw2 = atencao_seletiva(features, weight, bias, None)
    jax.block_until_ready((ctx2, attw2))
    ctx2_ref, attw2_ref = _reference(features, weight, bias, None)
    assert jnp.allclose(ctx2, ctx2_ref, atol=2e-3, rtol=2e-3)
    assert jnp.allclose(attw2, attw2_ref, atol=2e-3, rtol=2e-3)

    # 3) bf16 features: native-dtype VPU math, f32 accumulation on the reduces
    feat_bf16 = features.astype(jnp.bfloat16)
    ctx3, attw3 = atencao_seletiva(feat_bf16, weight, bias, mask)
    jax.block_until_ready((ctx3, attw3))
    ctx3_ref, attw3_ref = _reference(feat_bf16.astype(jnp.float32), weight, bias, mask)
    assert ctx3.dtype == jnp.bfloat16 and attw3.dtype == jnp.bfloat16
    assert jnp.allclose(ctx3.astype(jnp.float32), ctx3_ref, atol=2e-2, rtol=2e-2)
    assert jnp.allclose(attw3.astype(jnp.float32), attw3_ref, atol=2e-2, rtol=2e-2)

    # 4) multi sequence-block online-softmax path (forced small tiles)
    B4, S4 = 4, 256
    k_f4, k_m4 = jax.random.split(jax.random.PRNGKey(1), 2)
    feat4 = jax.random.normal(k_f4, (B4, S4, D), dtype=jnp.float32)
    mask4 = (jax.random.uniform(k_m4, (B4, S4)) > 0.25).astype(jnp.int32)
    ctx4, attw4 = atencao_seletiva(feat4, weight, bias, mask4, tile_hint=(8, 128))
    jax.block_until_ready((ctx4, attw4))
    ctx4_ref, attw4_ref = _reference(feat4, weight, bias, mask4)
    assert jnp.allclose(ctx4, ctx4_ref, atol=2e-3, rtol=2e-3)
    assert jnp.allclose(attw4, attw4_ref, atol=2e-3, rtol=2e-3)

    # 5) mask=None with a sequence length needing padding (in-kernel iota mask)
    S5 = 200
    feat5 = jax.random.normal(jax.random.PRNGKey(2), (B4, S5, D), dtype=jnp.float32)
    ctx5, attw5 = atencao_seletiva(feat5, weight, bias, None, tile_hint=(8, 128))
    jax.block_until_ready((ctx5, attw5))
    ctx5_ref, attw5_ref = _reference(feat5, weight, bias, None)
    assert jnp.allclose(ctx5, ctx5_ref, atol=2e-3, rtol=2e-3)
    assert jnp.allclose(attw5, attw5_ref, atol=2e-3, rtol=2e-3)

    print("KERNEL_OK")
</pallas_src>

<mosaic_0001>
module attributes {stable_mosaic.version = 11 : i64} {
  func.func @_atencao_kernel(%arg0: i32, %arg1: i32, %arg2: memref<8x8x32xf32, #tpu.memory_space<vmem>>, %arg3: memref<8x8xi32, #tpu.memory_space<vmem>>, %arg4: memref<1x32xf32, #tpu.memory_space<vmem>>, %arg5: memref<1x1xf32, #tpu.memory_space<vmem>>, %arg6: memref<8x32xf32, #tpu.memory_space<vmem>>, %arg7: memref<8x8xf32, #tpu.memory_space<vmem>>, %arg8: memref<8x1xf32, #tpu.memory_space<vmem>>, %arg9: memref<8x1xf32, #tpu.memory_space<vmem>>, %arg10: memref<8x32xf32, #tpu.memory_space<vmem>>) attributes {dimension_semantics = [#tpu.dimension_semantics<parallel>, #tpu.dimension_semantics<arbitrary>], iteration_bounds = array<i64: 1, 1>, scalar_prefetch = 0 : i64, scratch_operands = 3 : i64, tpu.core_type = #tpu.core_type<tc>, window_params = [{transform_indices = @transform_0, window_bounds = array<i64: 8, 8, 32>}, {transform_indices = @transform_1, window_bounds = array<i64: 8, 8>}, {pipeline_mode = #tpu.pipeline_mode<synchronous>, transform_indices = @transform_2, window_bounds = array<i64: 1, 32>}, {pipeline_mode = #tpu.pipeline_mode<synchronous>, transform_indices = @transform_3, window_bounds = array<i64: 1, 1>}, {transform_indices = @transform_4, window_bounds = array<i64: 8, 32>}, {transform_indices = @transform_5, window_bounds = array<i64: 8, 8>}]} {
    %c0_i32 = arith.constant 0 : i32
    %0 = arith.cmpi eq, %arg1, %c0_i32 : i32
    %1 = arith.extui %0 : i1 to i32
    %c0_i32_0 = arith.constant 0 : i32
    %2 = arith.cmpi ne, %1, %c0_i32_0 : i32
    scf.if %2 {
      %cst_28 = arith.constant 0xFF800000 : f32
      %45 = vector.broadcast %cst_28 : f32 to vector<8x1xf32>
      %c0_29 = arith.constant 0 : index
      %c0_30 = arith.constant 0 : index
      %46 = vector.load %arg8[%c0_29, %c0_30] : memref<8x1xf32, #tpu.memory_space<vmem>>, vector<8x1xf32>
      tpu.vector_store %arg8[%c0_29, %c0_30], %45 {strides = array<i32>} : memref<8x1xf32, #tpu.memory_space<vmem>>, vector<8x1xf32>,
      %cst_31 = arith.constant 0.000000e+00 : f32
      %47 = vector.broadcast %cst_31 : f32 to vector<8x1xf32>
      %c0_32 = arith.constant 0 : index
      %c0_33 = arith.constant 0 : index
      %48 = vector.load %arg9[%c0_32, %c0_33] : memref<8x1xf32, #tpu.memory_space<vmem>>, vector<8x1xf32>
      tpu.vector_store %arg9[%c0_32, %c0_33], %47 {strides = array<i32>} : memref<8x1xf32, #tpu.memory_space<vmem>>, vector<8x1xf32>,
      %cst_34 = arith.constant 0.000000e+00 : f32
      %49 = vector.broadcast %cst_34 : f32 to vector<8x32xf32>
      %c0_35 = arith.constant 0 : index
      %c0_36 = arith.constant 0 : index
      %50 = vector.load %arg10[%c0_35, %c0_36] : memref<8x32xf32, #tpu.memory_space<vmem>>, vector<8x32xf32>
      tpu.vector_store %arg10[%c0_35, %c0_36], %49 {strides = array<i32>} : memref<8x32xf32, #tpu.memory_space<vmem>>, vector<8x32xf32>,
    } else {
    }
    %c0 = arith.constant 0 : index
    %c0_1 = arith.constant 0 : index
    %c0_2 = arith.constant 0 : index
    %3 = vector.load %arg2[%c0, %c0_1, %c0_2] : memref<8x8x32xf32, #tpu.memory_space<vmem>>, vector<8x8x32xf32>
    %c0_3 = arith.constant 0 : index
    %c0_4 = arith.constant 0 : index
    %4 = vector.load %arg4[%c0_3, %c0_4] : memref<1x32xf32, #tpu.memory_space<vmem>>, vector<1x32xf32>
    %5 = vector.shape_cast %4 : vector<1x32xf32> to vector<1x1x32xf32>
    %6 = vector.broadcast %5 : vector<1x1x32xf32> to vector<8x8x32xf32>
    %7 = arith.mulf %3, %6 : vector<8x8x32xf32>
    %cst = arith.constant dense<0.000000e+00> : vector<8x8xf32>
    %8 = vector.multi_reduction <add>, %7, %cst [2] : vector<8x8x32xf32> to vector<8x8xf32>
    %c0_5 = arith.constant 0 : index
    %c0_6 = arith.constant 0 : index
    %9 = vector.load %arg5[%c0_5, %c0_6] : memref<1x1xf32, #tpu.memory_space<vmem>>, vector<1x1xf32>
    %10 = vector.broadcast %9 : vector<1x1xf32> to vector<8x8xf32>
    %11 = arith.addf %8, %10 : vector<8x8xf32>
    %c0_7 = arith.constant 0 : index
    %c0_8 = arith.constant 0 : index
    %12 = vector.load %arg3[%c0_7, %c0_8] : memref<8x8xi32, #tpu.memory_space<vmem>>, vector<8x8xi32>
    %c0_i32_9 = arith.constant 0 : i32
    %13 = vector.broadcast %c0_i32_9 : i32 to vector<8x8xi32>
    %14 = arith.cmpi eq, %12, %13 : vector<8x8xi32>
    %cst_10 = arith.constant -1.000000e+09 : f32
    %15 = vector.broadcast %cst_10 : f32 to vector<8x8xf32>
    %16 = arith.select %14, %15, %11 : vector<8x8xi1>, vector<8x8xf32>
    %c0_11 = arith.constant 0 : index
    %c0_12 = arith.constant 0 : index
    %17 = vector.load %arg8[%c0_11, %c0_12] : memref<8x1xf32, #tpu.memory_space<vmem>>, vector<8x1xf32>
    %cst_13 = arith.constant dense<0xFF800000> : vector<8xf32>
    %18 = vector.multi_reduction <maximumf>, %16, %cst_13 [1] : vector<8x8xf32> to vector<8xf32>
    %19 = vector.shape_cast %18 : vector<8xf32> to vector<8x1xf32>
    %20 = arith.maximumf %17, %19 : vector<8x1xf32>
    %21 = arith.subf %17, %20 : vector<8x1xf32>
    %22 = math.exp %21 : vector<8x1xf32>
    %23 = vector.broadcast %20 : vector<8x1xf32> to vector<8x8xf32>
    %24 = arith.subf %16, %23 : vector<8x8xf32>
    %25 = math.exp %24 : vector<8x8xf32>
    %c0_14 = arith.constant 0 : index
    %c0_15 = arith.constant 0 : index
    %26 = vector.load %arg9[%c0_14, %c0_15] : memref<8x1xf32, #tpu.memory_space<vmem>>, vector<8x1xf32>
    %27 = arith.mulf %22, %26 : vector<8x1xf32>
    %cst_16 = arith.constant dense<0.000000e+00> : vector<8xf32>
    %28 = vector.multi_reduction <add>, %25, %cst_16 [1] : vector<8x8xf32> to vector<8xf32>
    %29 = vector.shape_cast %28 : vector<8xf32> to vector<8x1xf32>
    %30 = arith.addf %27, %29 : vector<8x1xf32>
    %c0_17 = arith.constant 0 : index
    %c0_18 = arith.constant 0 : index
    %31 = vector.load %arg9[%c0_17, %c0_18] : memref<8x1xf32, #tpu.memory_space<vmem>>, vector<8x1xf32>
    tpu.vector_store %arg9[%c0_17, %c0_18], %30 {strides = array<i32>} : memref<8x1xf32, #tpu.memory_space<vmem>>, vector<8x1xf32>,
    %c0_19 = arith.constant 0 : index
    %c0_20 = arith.constant 0 : index
    %32 = vector.load %arg10[%c0_19, %c0_20] : memref<8x32xf32, #tpu.memory_space<vmem>>, vector<8x32xf32>
    %33 = vector.broadcast %22 : vector<8x1xf32> to vector<8x32xf32>
    %34 = arith.mulf %33, %32 : vector<8x32xf32>
    %35 = vector.shape_cast %25 : vector<8x8xf32> to vector<8x8x1xf32>
    %36 = vector.broadcast %35 : vector<8x8x1xf32> to vector<8x8x32xf32>
    %37 = arith.mulf %36, %3 : vector<8x8x32xf32>
    %cst_21 = arith.constant dense<0.000000e+00> : vector<8x32xf32>
    %38 = vector.multi_reduction <add>, %37, %cst_21 [1] : vector<8x8x32xf32> to vector<8x32xf32>
    %39 = arith.addf %34, %38 : vector<8x32xf32>
    %c0_22 = arith.constant 0 : index
    %c0_23 = arith.constant 0 : index
    %40 = vector.load %arg10[%c0_22, %c0_23] : memref<8x32xf32, #tpu.memory_space<vmem>>, vector<8x32xf32>
    tpu.vector_store %arg10[%c0_22, %c0_23], %39 {strides = array<i32>} : memref<8x32xf32, #tpu.memory_space<vmem>>, vector<8x32xf32>,
    %c0_24 = arith.constant 0 : index
    %c0_25 = arith.constant 0 : index
    %41 = vector.load %arg8[%c0_24, %c0_25] : memref<8x1xf32, #tpu.memory_space<vmem>>, vector<8x1xf32>
    tpu.vector_store %arg8[%c0_24, %c0_25], %20 {strides = array<i32>} : memref<8x1xf32, #tpu.memory_space<vmem>>, vector<8x1xf32>,
    %c0_i32_26 = arith.constant 0 : i32
    %42 = arith.cmpi eq, %arg1, %c0_i32_26 : i32
    %43 = arith.extui %42 : i1 to i32
    %c0_i32_27 = arith.constant 0 : i32
    %44 = arith.cmpi ne, %43, %c0_i32_27 : i32
    scf.if %44 {
      %c0_28 = arith.constant 0 : index
      %c0_29 = arith.constant 0 : index
      %45 = vector.load %arg9[%c0_28, %c0_29] : memref<8x1xf32, #tpu.memory_space<vmem>>, vector<8x1xf32>
      %cst_30 = arith.constant 1.000000e+00 : f32
      %46 = vector.broadcast %cst_30 : f32 to vector<8x1xf32>
      %47 = arith.divf %46, %45 : vector<8x1xf32>
      %c0_31 = arith.constant 0 : index
      %c0_32 = arith.constant 0 : index
      %48 = vector.load %arg10[%c0_31, %c0_32] : memref<8x32xf32, #tpu.memory_space<vmem>>, vector<8x32xf32>
      %49 = vector.broadcast %47 : vector<8x1xf32> to vector<8x32xf32>
      %50 = arith.mulf %48, %49 : vector<8x32xf32>
      %c0_33 = arith.constant 0 : index
      %c0_34 = arith.constant 0 : index
      %51 = vector.load %arg6[%c0_33, %c0_34] : memref<8x32xf32, #tpu.memory_space<vmem>>, vector<8x32xf32>
      tpu.vector_store %arg6[%c0_33, %c0_34], %50 {strides = array<i32>} : memref<8x32xf32, #tpu.memory_space<vmem>>, vector<8x32xf32>,
      %52 = vector.broadcast %47 : vector<8x1xf32> to vector<8x8xf32>
      %53 = arith.mulf %25, %52 : vector<8x8xf32>
      %c0_35 = arith.constant 0 : index
      %c0_36 = arith.constant 0 : index
      %54 = vector.load %arg7[%c0_35, %c0_36] : memref<8x8xf32, #tpu.memory_space<vmem>>, vector<8x8xf32>
      tpu.vector_store %arg7[%c0_35, %c0_36], %53 {strides = array<i32>} : memref<8x8xf32, #tpu.memory_space<vmem>>, vector<8x8xf32>,
    } else {
    }
    return
  }
  func.func @transform_0(%arg0: i32, %arg1: i32) -> (i32, i32, i32) {
    %c0_i32 = arith.constant 0 : i32
    %c0_i32_0 = arith.constant 0 : i32
    return %arg0, %arg1, %c0_i32 : i32, i32, i32
  }
  func.func @transform_1(%arg0: i32, %arg1: i32) -> (i32, i32) {
    %c0_i32 = arith.constant 0 : i32
    return %arg0, %arg1 : i32, i32
  }
  func.func @transform_2(%arg0: i32, %arg1: i32) -> (i32, i32) {
    %c0_i32 = arith.constant 0 : i32
    %c0_i32_0 = arith.constant 0 : i32
    %c0_i32_1 = arith.constant 0 : i32
    return %c0_i32, %c0_i32_0 : i32, i32
  }
  func.func @transform_3(%arg0: i32, %arg1: i32) -> (i32, i32) {
    %c0_i32 = arith.constant 0 : i32
    %c0_i32_0 = arith.constant 0 : i32
    %c0_i32_1 = arith.constant 0 : i32
    return %c0_i32, %c0_i32_0 : i32, i32
  }
  func.func @transform_4(%arg0: i32, %arg1: i32) -> (i32, i32) {
    %c0_i32 = arith.constant 0 : i32
    %c0_i32_0 = arith.constant 0 : i32
    return %arg0, %c0_i32 : i32, i32
  }
  func.func @transform_5(%arg0: i32, %arg1: i32) -> (i32, i32) {
    %c0_i32 = arith.constant 0 : i32
    %c0_i32_0 = arith.constant 0 : i32
    return %arg0, %c0_i32 : i32, i32
  }
}

</mosaic_0001>

<bundles_post_ra>
// kernel: tpu_custom_call.1
= control target key start
LH: loop header
LB: loop body
LE: loop exit
PB: predicated region body
PF: predicated region fallthrough
CT: control target
= control target key end

     0   :  { %s704_s0 = inlined_call_operand.hbm [shape: f32[8,8,32], index: 0, kind: input, shape index: {}]   ;;  %s705_s1 = inlined_call_operand.hbm [shape: s32[8,8], index: 1, kind: input, shape index: {}]   ;;  %s706_s2 = inlined_call_operand.vmem [shape: f32[1,32], index: 2, kind: input, shape index: {}]   ;;  %s707_s3 = inlined_call_operand.<no memory space> [shape: f32[1,1], index: 3, kind: input, shape index: {}]   ;;  %s708_s4 = inlined_call_operand.hbm [shape: f32[8,32], index: 4, kind: output, shape index: {0}]   ;;  %s709_s5 = inlined_call_operand.hbm [shape: f32[8,8], index: 5, kind: output, shape index: {1}]  }
   0x1   :  { %v11_v0 = vstv %s707_s3 }
   0x2   :  { %12 = vst [vmem:[#allocation5] sm:$0x1] %v11_v0 }
   0x3   :  { %13 = vsyncpa [#allocation7], 0 }
   0x4   :  { %14 = vsyncpa [#allocation10], 0 }
   0x5   :  { %15 = vsyncpa [#allocation8], 0 }
   0x6   :  { %16 = vsyncpa [#allocation13], 0  ;;  %s516_s20 = smov [#allocation6]   ;;  %s420_s24 = scalar_lea.hbm %s704_s0, 1024 }
   0x7   :  { %s22_s21 = sshll.u32 %s516_s20, 4  ;;  %p421_p0 = scmp.ne.s32.totalorder %s704_s0, %s420_s24  ;;  %s23_s21 = int_to_ptr.vmem [resolvable:$true] %s22_s21 }
   0x8   :  { %p424_p1 = scmp.lt.u32.totalorder %s420_s24, %s704_s0 }
   0xa   :  { %p426_p2 = pnand %p424_p1, %p421_p0 }
   0xc   :  { %429 = shalt.err (!%p426_p2)
}
   0xd   :  { %s430_s3 = scalar_lea.vmem %s23_s21, 1024  ;;  %p435_p4 = scmp.lt.s32.totalorder %s23_s21, %s23_s21 }
   0xe   :  { %p431_p3 = scmp.ne.s32.totalorder %s23_s21, %s430_s3  ;;  %p436_p5 = scmp.lt.s32.totalorder %s430_s3, %s430_s3 }
  0x10   :  { %p437_p6 = por %p436_p5, %p435_p4 }
  0x12   :  { %p438_p7 = pnand %p437_p6, %p431_p3 }
  0x14   :  { %441 = shalt.err (!%p438_p7)
}
  0x15   :  { %s517_s29 = smov 128   ;;  %s518_s30 = smov 8  }
  0x16   :  { %28 = dma.hbm_to_vmem [thread:$0]  %s704_s0, 1024, %s23_s21, [#allocation7], %s517_s29, %s517_s29, %s518_s30  }
  0x17   :  { %s519_s8 = smov [#allocation9]   ;;  %s442_s12 = scalar_lea.hbm %s705_s1, 128 }
  0x18   :  { %s35_s9 = sshll.u32 %s519_s8, 4  ;;  %p443_p8 = scmp.ne.s32.totalorder %s705_s1, %s442_s12  ;;  %s36_s9 = int_to_ptr.vmem [resolvable:$true] %s35_s9 }
  0x19   :  { %p446_p9 = scmp.lt.u32.totalorder %s442_s12, %s705_s1 }
  0x1b   :  { %p448_p10 = pnand %p446_p9, %p443_p8 }
  0x1d   :  { %451 = shalt.err (!%p448_p10)
}
  0x1e   :  { %s452_s17 = scalar_lea.vmem %s36_s9, 128  ;;  %p457_p12 = scmp.lt.s32.totalorder %s36_s9, %s36_s9 }
  0x1f   :  { %p453_p11 = scmp.ne.s32.totalorder %s36_s9, %s452_s17  ;;  %p458_p13 = scmp.lt.s32.totalorder %s452_s17, %s452_s17 }
  0x21   :  { %p459_p0 = por %p458_p13, %p457_p12 }
  0x23   :  { %p460_p1 = pnand %p459_p0, %p453_p11 }
  0x25   :  { %463 = shalt.err (!%p460_p1)
}
  0x26   :  { %38 = dma.hbm_to_vmem [thread:$0]  %s705_s1, 128, %s36_s9, [#allocation10]  }
  0x27   :  { %508 = dma.done.wait [#allocation7], 1024  }
  0x28   :  { %509 = vsyncadd [#allocation7], 4294966272 }
  0x29   :  { %510 = dma.done.wait [#allocation10], 128  }
  0x2a   :  { %511 = vsyncadd [#allocation10], 4294967168  ;;  %v520_v1 = vmov 0   ;;  %vm56_vm0 = vcmask 261120   ;;  %v582_v2 = vld [vmem:[#allocation6] sm:$0xff]  ;;  %v587_v4 = vld [vmem:[#allocation6 + $0x8] sm:$0xff]  ;;  %v134_v34 = vlaneseq }
  0x2b   :  { %412 = vset.pattern.permute.xlu0 %v520_v1  ;;  %413 = vset.pattern.permute.xlu1 %v520_v1  ;;  %v401_v3 = vld [vmem:[%s706_s2] ss:$0 sm:$0xff]  ;;  %v591_v7 = vld [vmem:[#allocation6 + $0x10] sm:$0xff]  ;;  %v593_v8 = vld [vmem:[#allocation6 + $0x18] sm:$0xff]  ;;  %vm53_vm1 = vcmask 7168   ;;  %v521_v28 = vmov -inf  }
  0x2c   :  { %v73_v5 = vmul.f32 %v401_v3, %v582_v2  ;;  %v74_v6 = vmul.f32 %v401_v3, %v587_v4  ;;  %v75_v9 = vmul.f32 %v401_v3, %v591_v7  ;;  %v596_v10 = vld [vmem:[#allocation6 + $0x20] sm:$0xff]  ;;  %v76_v11 = vmul.f32 %v401_v3, %v593_v8  ;;  %v600_v13 = vld [vmem:[#allocation6 + $0x28] sm:$0xff]  ;;  %v606_v18 = vld [vmem:[#allocation6 + $0x30] sm:$0xff]  ;;  %54 = vst.msk [vmem:[#allocation2] sm:$0xff] %vm53_vm1, %v521_v28  ;;  %s523_s1 = smov [#allocation11]   ;;  %s524_s21 = smov [#allocation12]  }
  0x2d   :  { %v77_v16 = vmul.f32 %v401_v3, %v596_v10  ;;  %v78_v19 = vmul.f32 %v401_v3, %v600_v13  ;;  %v609_v20 = vld [vmem:[#allocation6 + $0x38] sm:$0xff]  ;;  %v79_v22 = vmul.f32 %v401_v3, %v606_v18  ;;  %v135_v35 = vand.u32 127, %v134_v34  ;;  %v124_v55 = vld [vmem:[#allocation9] sm:$0xff]  ;;  %s377_s2 = sshll.u32 %s523_s1, 4  ;;  %s387_s22 = sshll.u32 %s524_s21, 4  ;;  %s378_s2 = int_to_ptr.vmem [resolvable:$true] %s377_s2  ;;  %s388_s22 = int_to_ptr.vmem [resolvable:$true] %s387_s22 }
  0x2e   :  { %v82_v12 = vsel %vm56_vm0, %v73_v5, 0.0  ;;  %v88_v14 = vsel %vm56_vm0, %v75_v9, 0.0  ;;  %v85_v15 = vsel %vm56_vm0, %v74_v6, 0.0  ;;  %v91_v17 = vsel %vm56_vm0, %v76_v11, 0.0  ;;  %v402_v27 = vld [vmem:[#allocation5] ss:$0 sm:$0xff]  ;;  %p469_p3 = scmp.lt.s32.totalorder %s378_s2, %s378_s2 }
  0x2f   :  { %83 = vadd.xlane.f32.xlu0 %v82_v12  ;;  %89 = vadd.xlane.f32.xlu1 %v88_v14  ;;  %v94_v21 = vsel %vm56_vm0, %v77_v16, 0.0  ;;  %v97_v23 = vsel %vm56_vm0, %v78_v19, 0.0  ;;  %v80_v24 = vmul.f32 %v401_v3, %v609_v20  ;;  %v100_v25 = vsel %vm56_vm0, %v79_v22, 0.0  ;;  %s464_s23 = scalar_lea.vmem %s378_s2, 128 }
  0x30   :  { %v618_v36 = vshrl.u32 %v134_v34, 7  ;;  %vm168_vm2 = vcmask 1041409   ;;  %vm170_vm3 = vcmask 1042434   ;;  %vm172_vm4 = vcmask 1043459   ;;  %p465_p2 = scmp.ne.s32.totalorder %s378_s2, %s464_s23  ;;  %p470_p4 = scmp.lt.s32.totalorder %s464_s23, %s464_s23 }
  0x31   :  { %v103_v26 = vsel %vm56_vm0, %v80_v24, 0.0  ;;  %vm174_vm5 = vcmask 1044484   ;;  %vm176_vm6 = vcmask 1045509   ;;  %vm178_vm7 = vcmask 1046534  }
  0x32   :  { %v138_v39 = vsub.s32 %v135_v35, %v618_v36  ;;  %vm180_vm8 = vcmask 1047559   ;;  %vm125_vm9 = vcmp.eq.s32.totalorder %v124_v55, 0  ;;  %vm185_vm10 = vcmask 64512   ;;  %p471_p5 = por %p470_p4, %p469_p3 }
  0x33   :  { %86 = vadd.xlane.f32.xlu0 %v85_v15  ;;  %92 = vadd.xlane.f32.xlu1 %v91_v17  ;;  %v522_v6 = vmov 0.0   ;;  %v184_v9 = vld [vmem:[#allocation2] sm:$0xff]  ;;  %v218_v19 = vsub.s32 0, %v618_v36  ;;  %v225_v24 = vsub.s32 1, %v618_v36  ;;  %v239_v28 = vsub.s32 3, %v618_v36 }
  0x34   :  { %55 = vst.msk [vmem:[#allocation3] sm:$0xff] %vm53_vm1, %v522_v6  ;;  %v260_v35 = vsub.s32 6, %v618_v36  ;;  %p472_p6 = pnand %p471_p5, %p465_p2 }
  0x35   :  { %57 = vst.msk [vmem:[#allocation4] sm:$0xff] %vm56_vm0, %v522_v6 }
  0x37   :  { %95 = vadd.xlane.f32.xlu0 %v94_v21  ;;  %98 = vadd.xlane.f32.xlu1 %v97_v23 }
  0x3b   :  { %101 = vadd.xlane.f32.xlu0 %v100_v25  ;;  %104 = vadd.xlane.f32.xlu1 %v103_v26  ;;  %v232_v26 = vsub.s32 2, %v618_v36 }
  0x51   :  { %113 = vperm.xlu0 %412, %v402_v27  }
  0xbc   :  { %v84_v29 = vpop.xlane.xlu0 %83  ;;  %v90_v31 = vpop.xlane.xlu1 %89 }
  0xc0   :  { %v87_v30 = vpop.xlane.xlu0 %86  ;;  %v93_v33 = vpop.xlane.xlu1 %92 }
  0xc4   :  { %v96_v32 = vpop.xlane.xlu0 %95  ;;  %v99_v38 = vpop.xlane.xlu1 %98 }
  0xc8   :  { %v102_v37 = vpop.xlane.xlu0 %101  ;;  %v105_v45 = vpop.xlane.xlu1 %104 }
  0xd0   :  { %v114_v40 = vpop.permute.xlu0 %113 }
  0xd1   :  { %v116_v41 = vadd.f32 %v114_v40, %v84_v29  ;;  %v117_v42 = vadd.f32 %v114_v40, %v87_v30  ;;  %v118_v43 = vadd.f32 %v114_v40, %v90_v31  ;;  %v119_v44 = vadd.f32 %v114_v40, %v93_v33 }
  0xd2   :  { %v120_v46 = vadd.f32 %v114_v40, %v96_v32  ;;  %v121_v47 = vadd.f32 %v114_v40, %v99_v38  ;;  %v122_v51 = vadd.f32 %v114_v40, %v102_v37  ;;  %v123_v52 = vadd.f32 %v114_v40, %v105_v45 }
  0xd3   :  { %v139_v48 = vrot.slane %v116_v41, %v138_v39  ;;  %v143_v49 = vrot.slane %v117_v42, %v138_v39  ;;  %v147_v50 = vrot.slane %v118_v43, %v138_v39  ;;  %v151_v53 = vrot.slane %v119_v44, %v138_v39 }
  0xd4   :  { %v155_v56 = vrot.slane %v120_v46, %v138_v39  ;;  %v159_v58 = vrot.slane %v121_v47, %v138_v39  ;;  %v163_v60 = vrot.slane %v122_v51, %v138_v39  ;;  %v167_v62 = vrot.slane %v123_v52, %v138_v39 }
  0xd5   :  { %v169_v54 = vsel %vm168_vm2, %v143_v49, %v139_v48  ;;  %v253_v30 = vsub.s32 5, %v618_v36  ;;  %v246_v31 = vsub.s32 4, %v618_v36  ;;  %v267_v38 = vsub.s32 7, %v618_v36 }
  0xd6   :  { %v171_v57 = vsel %vm170_vm3, %v147_v50, %v169_v54 }
  0xd7   :  { %v173_v59 = vsel %vm172_vm4, %v151_v53, %v171_v57  ;;  %v201_v57 = vld [vmem:[#allocation3] sm:$0xff] }
  0xd8   :  { %v175_v61 = vsel %vm174_vm5, %v155_v56, %v173_v59 }
  0xd9   :  { %v177_v63 = vsel %vm176_vm6, %v159_v58, %v175_v61 }
  0xda   :  { %v179_v0 = vsel %vm178_vm7, %v163_v60, %v177_v63 }
  0xdb   :  { %v181_v1 = vsel %vm180_vm8, %v167_v62, %v179_v0 }
  0xdc   :  { %v183_v3 = vsel %vm125_vm9, -1e+09, %v181_v1 }
  0xdd   :  { %v186_v5 = vsel %vm185_vm10, %v183_v3, -inf }
  0xde   :  { %187 = vmax.xlane.f32.xlu1 %v186_v5 }
 0x16b   :  { %v188_v11 = vpop.xlane.xlu1 %187 }
 0x16c   :  { %v189_v12 = vmax.f32 %v184_v9, %v188_v11 }
 0x16e   :  { %v190_v14 = vsub.f32 %v184_v9, %v189_v12  ;;  %354 = vst.msk [vmem:[#allocation2] sm:$0xff] %vm53_vm1, %v189_v12  ;;  %195 = vperm.xlu1 %413, %v189_v12  }
 0x170   :  { %v191_v32 = vmul.f32 1.442695, %v190_v14 }
 0x1ed   :  { %v196_v15 = vpop.permute.xlu1 %195 }
 0x1ee   :  { %v198_v16 = vsub.f32 %v183_v3, %v196_v15 }
 0x1f0   :  { %v199_v17 = vmul.f32 1.442695, %v198_v16 }
 0x1f2   :  { %414 = vpow2.f32 %v199_v17 }
 0x1f3   :  { %416 = vpow2.f32 %v191_v32 }
 0x1fc   :  { %v633_v21 = vpop.eup %414 }
 0x1fd   :  { %v203_v22 = vsel %vm185_vm10, %v633_v21, 0.0  ;;  %v219_v23 = vrot.slane %v633_v21, %v218_v19  ;;  %v226_v25 = vrot.slane %v633_v21, %v225_v24  ;;  %v233_v27 = vrot.slane %v633_v21, %v232_v26  ;;  %v417_v40 = vpop.eup %416 }
 0x1fe   :  { %204 = vadd.xlane.f32.xlu1 %v203_v22  ;;  %v240_v29 = vrot.slane %v633_v21, %v239_v28  ;;  %v254_v33 = vrot.slane %v633_v21, %v253_v30  ;;  %v247_v34 = vrot.slane %v633_v21, %v246_v31  ;;  %v261_v37 = vrot.slane %v633_v21, %v260_v35 }
 0x1ff   :  { %221 = vbcast.lane.b32.xlu0 %v219_v23, 256  ;;  %v268_v39 = vrot.slane %v633_v21, %v267_v38  ;;  %v202_v62 = vmul.f32 %v417_v40, %v201_v57 }
 0x203   :  { %228 = vbcast.lane.b32.xlu0 %v226_v25, 256 }
 0x207   :  { %235 = vbcast.lane.b32.xlu0 %v233_v27, 256 }
 0x20b   :  { %242 = vbcast.lane.b32.xlu0 %v240_v29, 256 }
 0x20f   :  { %256 = vbcast.lane.b32.xlu0 %v254_v33, 256  ;;  %249 = vbcast.lane.b32.xlu1 %v247_v34, 256 }
 0x213   :  { %263 = vbcast.lane.b32.xlu0 %v261_v37, 256 }
 0x217   :  { %270 = vbcast.lane.b32.xlu0 %v268_v39, 256 }
 0x21b   :  { %212 = vperm.xlu0 %412, %v417_v40  }
 0x271   :  { %v222_v41 = vpop.permute.xlu0 %221 }
 0x272   :  { %v272_v47 = vmul.f32 %v222_v41, %v582_v2 }
 0x274   :  { %v280_v51 = vsel %vm56_vm0, %v272_v47, 0.0 }
 0x275   :  { %v229_v42 = vpop.permute.xlu0 %228  ;;  %v281_v56 = vrot.slane %v280_v51, 4 }
 0x276   :  { %v273_v44 = vmul.f32 %v229_v42, %v587_v4 }
 0x277   :  { %v282_v63 = vadd.f32 %v281_v56, %v280_v51 }
 0x278   :  { %v287_v36 = vsel %vm56_vm0, %v273_v44, 0.0 }
 0x279   :  { %v236_v43 = vpop.permute.xlu0 %235  ;;  %v288_v54 = vrot.slane %v287_v36, 4  ;;  %v283_v14 = vrot.slane %v282_v63, 2 }
 0x27a   :  { %v274_v46 = vmul.f32 %v236_v43, %v591_v7 }
 0x27b   :  { %v289_v58 = vadd.f32 %v288_v54, %v287_v36  ;;  %v284_v25 = vadd.f32 %v283_v14, %v282_v63 }
 0x27c   :  { %v294_v50 = vsel %vm56_vm0, %v274_v46, 0.0 }
 0x27d   :  { %v243_v45 = vpop.permute.xlu0 %242  ;;  %v295_v4 = vrot.slane %v294_v50, 4  ;;  %v290_v6 = vrot.slane %v289_v58, 2  ;;  %v285_v37 = vrot.slane %v284_v25, 1 }
 0x27e   :  { %v275_v48 = vmul.f32 %v243_v45, %v593_v8 }
 0x27f   :  { %v296_v60 = vadd.f32 %v295_v4, %v294_v50  ;;  %v291_v22 = vadd.f32 %v290_v6, %v289_v58  ;;  %v286_v45 = vadd.f32 %v285_v37, %v284_v25  ;;  %v209_v4 = vld [vmem:[#allocation4] sm:$0xff] }
 0x280   :  { %v301_v52 = vsel %vm56_vm0, %v275_v48, 0.0 }
 0x281   :  { %v257_v49 = vpop.permute.xlu0 %256  ;;  %v302_v7 = vrot.slane %v301_v52, 4  ;;  %v297_v11 = vrot.slane %v296_v60, 2  ;;  %v292_v31 = vrot.slane %v291_v22, 1 }
 0x282   :  { %v277_v53 = vmul.f32 %v257_v49, %v600_v13 }
 0x283   :  { %v303_v0 = vadd.f32 %v302_v7, %v301_v52 }
 0x284   :  { %v315_v8 = vsel %vm56_vm0, %v277_v53, 0.0 }
 0x285   :  { %v264_v55 = vpop.permute.xlu0 %263  ;;  %v316_v1 = vrot.slane %v315_v8, 4  ;;  %v304_v15 = vrot.slane %v303_v0, 2 }
 0x286   :  { %v278_v2 = vmul.f32 %v264_v55, %v606_v18 }
 0x287   :  { %v317_v16 = vadd.f32 %v316_v1, %v315_v8  ;;  %v305_v26 = vadd.f32 %v304_v15, %v303_v0 }
 0x288   :  { %v322_v59 = vsel %vm56_vm0, %v278_v2, 0.0 }
 0x289   :  { %v271_v61 = vpop.permute.xlu0 %270  ;;  %v323_v3 = vrot.slane %v322_v59, 4  ;;  %v318_v27 = vrot.slane %v317_v16, 2  ;;  %v306_v38 = vrot.slane %v305_v26, 1 }
 0x28a   :  { %v279_v13 = vmul.f32 %v271_v61, %v609_v20  ;;  %v298_v20 = vadd.f32 %v297_v11, %v296_v60 }
 0x28b   :  { %v205_v5 = vpop.xlane.xlu1 %204  ;;  %v324_v17 = vadd.f32 %v323_v3, %v322_v59  ;;  %v319_v39 = vadd.f32 %v318_v27, %v317_v16  ;;  %v307_v46 = vadd.f32 %v306_v38, %v305_v26 }
 0x28c   :  { %v329_v9 = vsel %vm56_vm0, %v279_v13, 0.0  ;;  %v206_v18 = vadd.f32 %v205_v5, %v202_v62  ;;  %v299_v33 = vrot.slane %v298_v20, 1 }
 0x28d   :  { %v330_v12 = vrot.slane %v329_v9, 4  ;;  %v325_v29 = vrot.slane %v324_v17, 2  ;;  %v320_v47 = vrot.slane %v319_v39, 1 }
 0x28e   :  { %208 = vst.msk [vmem:[#allocation3] sm:$0xff] %vm53_vm1, %v206_v18  ;;  %v300_v43 = vadd.f32 %v299_v33, %v298_v20 }
 0x28f   :  { %v250_v19 = vpop.permute.xlu1 %249  ;;  %v331_v23 = vadd.f32 %v330_v12, %v329_v9  ;;  %v326_v40 = vadd.f32 %v325_v29, %v324_v17  ;;  %v321_v54 = vadd.f32 %v320_v47, %v319_v39 }
 0x290   :  { %v276_v24 = vmul.f32 %v250_v19, %v596_v10  ;;  %v293_v10 = vadd.f32 %v292_v31, %v291_v22 }
 0x291   :  { %v332_v32 = vrot.slane %v331_v23, 2  ;;  %v327_v48 = vrot.slane %v326_v40, 1 }
 0x292   :  { %v308_v28 = vsel %vm56_vm0, %v276_v24, 0.0  ;;  %v344_v49 = vsel %vm168_vm2, %v293_v10, %v286_v45 }
 0x293   :  { %v309_v30 = vrot.slane %v308_v28, 4  ;;  %v333_v42 = vadd.f32 %v332_v32, %v331_v23  ;;  %v345_v51 = vsel %vm170_vm3, %v300_v43, %v344_v49  ;;  %v328_v56 = vadd.f32 %v327_v48, %v326_v40 }
 0x294   :  { %v346_v53 = vsel %vm172_vm4, %v307_v46, %v345_v51 }
 0x295   :  { %v310_v34 = vadd.f32 %v309_v30, %v308_v28  ;;  %v358_v35 = vld [vmem:[#allocation3] sm:$0xff]  ;;  %v334_v50 = vrot.slane %v333_v42, 1 }
 0x296   :  { %418 = vrcp.f32 %v358_v35 }
 0x297   :  { %v311_v41 = vrot.slane %v310_v34, 2  ;;  %v335_v57 = vadd.f32 %v334_v50, %v333_v42 }
 0x299   :  { %v312_v44 = vadd.f32 %v311_v41, %v310_v34 }
 0x29a   :  { %v213_v55 = vpop.permute.xlu0 %212 }
 0x29b   :  { %v313_v36 = vrot.slane %v312_v44, 1  ;;  %v215_v59 = vmul.f32 %v213_v55, %v209_v4 }
 0x29d   :  { %v314_v52 = vadd.f32 %v313_v36, %v312_v44 }
 0x29f   :  { %v347_v7 = vsel %vm174_vm5, %v314_v52, %v346_v53 }
 0x2a0   :  { %v419_v2 = vpop.eup %418  ;;  %v348_v8 = vsel %vm176_vm6, %v321_v54, %v347_v7 }
 0x2a1   :  { %v349_v58 = vsel %vm178_vm7, %v328_v56, %v348_v8  ;;  %364 = vperm.xlu1 %413, %v419_v2  }
 0x2a2   :  { %v350_v60 = vsel %vm180_vm8, %v335_v57, %v349_v58 }
 0x2a3   :  { %v352_v61 = vadd.f32 %v350_v60, %v215_v59 }
 0x2a5   :  { %353 = vst.msk [vmem:[#allocation4] sm:$0xff] %vm56_vm0, %v352_v61 }
 0x2ac   :  { %v361_v62 = vld [vmem:[#allocation4] sm:$0xff] }
 0x320   :  { %v365_v63 = vpop.permute.xlu1 %364 }
 0x321   :  { %v367_v0 = vmul.f32 %v365_v63, %v361_v62  ;;  %v369_v1 = vmul.f32 %v633_v21, %v365_v63 }
 0x323   :  { %368 = vst.msk [vmem:[#allocation11] sm:$0xff] %vm56_vm0, %v367_v0 }
 0x324   :  { %370 = vst.msk [vmem:[#allocation12] sm:$0xff] %vm185_vm10, %v369_v1 }
 0x325   :  { %475 = shalt.err (!%p472_p6)
}
 0x326   :  { %s476_s26 = scalar_lea.hbm %s708_s4, 128 }
 0x327   :  { %p477_p7 = scmp.ne.s32.totalorder %s708_s4, %s476_s26  ;;  %p480_p8 = scmp.lt.u32.totalorder %s476_s26, %s708_s4 }
 0x329   :  { %p482_p9 = pnand %p480_p8, %p477_p7 }
 0x32b   :  { %485 = shalt.err (!%p482_p9)
}
 0x32c   :  { %380 = dma.vmem_to_hbm [thread:$0]  %s378_s2, 128, %s708_s4, [#allocation8]  }
 0x32d   :  { %s486_s7 = scalar_lea.vmem %s388_s22, 128  ;;  %p491_p11 = scmp.lt.s32.totalorder %s388_s22, %s388_s22 }
 0x32e   :  { %p487_p10 = scmp.ne.s32.totalorder %s388_s22, %s486_s7  ;;  %p492_p12 = scmp.lt.s32.totalorder %s486_s7, %s486_s7 }
 0x330   :  { %p493_p13 = por %p492_p12, %p491_p11 }
 0x332   :  { %p494_p0 = pnand %p493_p13, %p487_p10 }
 0x334   :  { %497 = shalt.err (!%p494_p0)
}
 0x335   :  { %s498_s10 = scalar_lea.hbm %s709_s5, 128 }
 0x336   :  { %p499_p1 = scmp.ne.s32.totalorder %s709_s5, %s498_s10  ;;  %p502_p2 = scmp.lt.u32.totalorder %s498_s10, %s709_s5 }
 0x338   :  { %p504_p3 = pnand %p502_p2, %p499_p1 }
 0x33a   :  { %507 = shalt.err (!%p504_p3)
}
 0x33b   :  { %390 = dma.vmem_to_hbm [thread:$0]  %s388_s22, 128, %s709_s5, [#allocation13]  }
 0x33c   :  { %512 = dma.done.wait [#allocation8], 128  }
 0x33d   :  { %513 = vsyncadd [#allocation8], 4294967168 }
 0x33e   :  { %514 = dma.done.wait [#allocation13], 128  }
 0x33f   :  { %515 = vsyncadd [#allocation13], 4294967168 }
 0x340   :  { %397 = vsyncpa [#allocation7], 1 }
 0x341   :  { %398 = vsyncpa [#allocation10], 1 }
 0x342   :  { %399 = vsyncpa [#allocation8], 1 }
 0x343   :  { %400 = vsyncpa [#allocation13], 1 }

</bundles_post_ra>
